<compile_context>
chip_gen: v6e
topology: v6e:2x2x1
jax: 0.10.0
libtpu: 0.0.40
codegen_flags: <defaults>
</compile_context>

<pallas_src>
import jax
import jax.numpy as jnp
from jax.experimental import pallas as pl
from jax.experimental.pallas import tpu as pltpu


def _drop_channel_kernel(x_ref, m_ref, o_ref):
    # x_ref: (block_rows, block_cols) data tile; m_ref: (block_rows, 1) 0/1 keep-mask.
    # Pure broadcast-multiply: HBM-bandwidth bound, no in-kernel PRNG, no rescaling.
    o_ref[...] = x_ref[...] * m_ref[...]


def _round_up(x, m):
    return ((x + m - 1) // m) * m


def _round_down(x, m):
    return (x // m) * m


def _block_budget_bytes():
    """Per-block byte budget, generation-aware (perf review)."""
    try:
        info = pltpu.get_tpu_info()
        vmem = getattr(info, "vmem_capacity_bytes", 128 << 20)
        if vmem <= (64 << 20):  # v7x-class part: bigger blocks amortize per-step cost
            return 4 << 20
    except Exception:
        pass
    return 2 << 20  # v5e/v6e and safe default: fits 16 MiB scoped VMEM double-buffered


def drop_channel(x, seed, drop_prob, *, training=True, block_bytes=None, donate=False):
    """JAX/Pallas equivalent of DropChannel.forward.

    Args:
      x: (bs, c, h, w) float array (NCHW, same convention as PyTorch).
      seed: python int used to derive the Bernoulli draw (one per (batch, channel)).
      drop_prob: probability of zeroing an entire channel (no 1/keep_prob rescaling).
      training: if False (or drop_prob == 0), returns x unchanged.
      block_bytes: optional override of the per-block byte budget (testing/tuning).
      donate: if True, alias the input buffer to the output (caller must donate x).
    """
    if (not training) or drop_prob == 0.0:
        return x

    assert x.ndim == 4, "Expected input with 4 dimensions (bsize, channels, height, width)"
    bs, c, h, w = x.shape
    keep_prob = 1.0 - float(drop_prob)
    BC, HW = bs * c, h * w

    x2 = x.reshape(BC, HW)

    # One Bernoulli(keep_prob) draw per (batch, channel) row, hoisted out of the kernel.
    key = jax.random.PRNGKey(seed)
    mask = jax.random.bernoulli(key, keep_prob, (BC, 1)).astype(x.dtype)

    # Lane-sparse spatial extent: a standalone Pallas pass would hit masked partial
    # stores (measured up to ~4.5x non-compute wall); let XLA fuse the multiply instead.
    if HW < 128:
        return (x2 * mask).reshape(bs, c, h, w)

    itemsize = jnp.dtype(x.dtype).itemsize
    sublane = {4: 8, 2: 16, 1: 32}.get(itemsize, 8)
    budget = int(block_bytes) if block_bytes is not None else _block_budget_bytes()
    budget = max(budget, sublane * 128 * itemsize)  # never below one (sublane,128) tile

    row_bytes = HW * itemsize
    if sublane * row_bytes > budget:
        # Even a minimal-row block is too large: tile HW in 128-lane multiples so the
        # double-buffered in+out footprint stays inside scoped VMEM on every generation.
        block_cols = max(128, _round_down(budget // (sublane * itemsize), 128))
        block_rows = sublane
    else:
        block_cols = HW
        block_rows = max(sublane, _round_down(budget // row_bytes, sublane))
    block_rows = min(block_rows, BC)  # block_rows == BC (full extent) is also legal

    rows_grid = pl.cdiv(BC, block_rows)
    cols_grid = pl.cdiv(HW, block_cols)

    # Ensure >=2 grid steps on the parallel axes when possible, so v7x's two
    # TensorCores both get work (no effect on single-TC v5e/v6e beyond tiny overhead).
    if rows_grid * cols_grid < 2 and BC > sublane:
        block_rows = _round_up(pl.cdiv(BC, 2), sublane)
        rows_grid = pl.cdiv(BC, block_rows)

    grid = (rows_grid, cols_grid)  # inner (cols) axis fastest: mask block stays resident

    kwargs = {}
    if donate:
        kwargs["input_output_aliases"] = {0: 0}  # alias x2 -> output (halves HBM alloc)

    out2 = pl.pallas_call(
        _drop_channel_kernel,
        out_shape=jax.ShapeDtypeStruct((BC, HW), x.dtype),
        grid=grid,
        in_specs=[
            pl.BlockSpec((block_rows, block_cols), lambda i, j: (i, j)),  # data tile
            pl.BlockSpec((block_rows, 1), lambda i, j: (i, 0)),           # per-row mask
        ],
        out_specs=pl.BlockSpec((block_rows, block_cols), lambda i, j: (i, j)),
        compiler_params=pltpu.CompilerParams(
            dimension_semantics=("parallel", "parallel"),
        ),
        **kwargs,
    )(x2, mask)

    return out2.reshape(bs, c, h, w)


def _check(x, out, seed, drop_prob):
    bs, c = x.shape[0], x.shape[1]
    xn = jax.device_get(x)
    on = jax.device_get(out)
    ref_mask = jax.device_get(
        jax.random.bernoulli(jax.random.PRNGKey(seed), 1.0 - drop_prob, (bs * c, 1))
    ).reshape(bs, c)
    for b in range(bs):
        for ch in range(c):
            if ref_mask[b, ch]:
                assert (on[b, ch] == xn[b, ch]).all()
            else:
                assert (on[b, ch] == 0).all()


if __name__ == "__main__":
    key = jax.random.PRNGKey(0)
    drop_prob = 0.5
    seed = 1234

    # Case 1: single-ish block path (bs=2, c=4, 16x16 -> HW=256, lane-dense).
    bs, c, h, w = 2, 4, 16, 16
    x = jax.random.normal(key, (bs, c, h, w), dtype=jnp.float32)
    out = jax.block_until_ready(drop_channel(x, seed=seed, drop_prob=drop_prob))
    _check(x, out, seed, drop_prob)

    # Eval / drop_prob==0 paths return the input unchanged.
    xn = jax.device_get(x)
    assert (jax.device_get(drop_channel(x, 0, drop_prob, training=False)) == xn).all()
    assert (jax.device_get(drop_channel(x, 0, 0.0, training=True)) == xn).all()

    # Case 2: row axis split into >=2 parallel grid steps (bs=2, c=8, 32x32).
    x2 = jax.random.normal(jax.random.PRNGKey(1), (2, 8, 32, 32), dtype=jnp.float32)
    out2 = jax.block_until_ready(drop_channel(x2, seed=seed, drop_prob=drop_prob))
    _check(x2, out2, seed, drop_prob)

    # Case 3: force the HW-tiling fallback with a tiny block budget (exercises the
    # 2-D grid / 128-lane column tiling path at small cost).
    out3 = jax.block_until_ready(
        drop_channel(x2, seed=seed, drop_prob=drop_prob, block_bytes=8 * 128 * 4)
    )
    _check(x2, out3, seed, drop_prob)

    print("KERNEL_OK")
</pallas_src>

<mosaic_0001>
module attributes {stable_mosaic.version = 11 : i64} {
  func.func @_drop_channel_kernel(%arg0: i32, %arg1: i32, %arg2: memref<8x256xf32, #tpu.memory_space<vmem>>, %arg3: memref<8x1xf32, #tpu.memory_space<vmem>>, %arg4: memref<8x256xf32, #tpu.memory_space<vmem>>) attributes {dimension_semantics = [#tpu.dimension_semantics<parallel>, #tpu.dimension_semantics<parallel>], iteration_bounds = array<i64: 1, 1>, scalar_prefetch = 0 : i64, scratch_operands = 0 : i64, tpu.core_type = #tpu.core_type<tc>, window_params = [{transform_indices = @transform_0, window_bounds = array<i64: 8, 256>}, {transform_indices = @transform_1, window_bounds = array<i64: 8, 1>}, {transform_indices = @transform_2, window_bounds = array<i64: 8, 256>}]} {
    %c0 = arith.constant 0 : index
    %c0_0 = arith.constant 0 : index
    %0 = vector.load %arg2[%c0, %c0_0] : memref<8x256xf32, #tpu.memory_space<vmem>>, vector<8x256xf32>
    %c0_1 = arith.constant 0 : index
    %c0_2 = arith.constant 0 : index
    %1 = vector.load %arg3[%c0_1, %c0_2] : memref<8x1xf32, #tpu.memory_space<vmem>>, vector<8x1xf32>
    %2 = vector.broadcast %1 : vector<8x1xf32> to vector<8x256xf32>
    %3 = arith.mulf %0, %2 : vector<8x256xf32>
    %c0_3 = arith.constant 0 : index
    %c0_4 = arith.constant 0 : index
    %4 = vector.load %arg4[%c0_3, %c0_4] : memref<8x256xf32, #tpu.memory_space<vmem>>, vector<8x256xf32>
    tpu.vector_store %arg4[%c0_3, %c0_4], %3 {strides = array<i32>} : memref<8x256xf32, #tpu.memory_space<vmem>>, vector<8x256xf32>,
    return
  }
  func.func @transform_0(%arg0: i32, %arg1: i32) -> (i32, i32) {
    %c0_i32 = arith.constant 0 : i32
    return %arg0, %arg1 : i32, i32
  }
  func.func @transform_1(%arg0: i32, %arg1: i32) -> (i32, i32) {
    %c0_i32 = arith.constant 0 : i32
    %c0_i32_0 = arith.constant 0 : i32
    return %arg0, %c0_i32 : i32, i32
  }
  func.func @transform_2(%arg0: i32, %arg1: i32) -> (i32, i32) {
    %c0_i32 = arith.constant 0 : i32
    return %arg0, %arg1 : i32, i32
  }
}

</mosaic_0001>

<bundles_post_ra>
// kernel: tpu_custom_call.1
= control target key start
LH: loop header
LB: loop body
LE: loop exit
PB: predicated region body
PF: predicated region fallthrough
CT: control target
= control target key end

     0   :  { %7 = vsyncpa [#allocation3], 0  ;;  %s126_s0 = inlined_call_operand.hbm [shape: f32[8,256], index: 0, kind: input, shape index: {}]   ;;  %s127_s1 = inlined_call_operand.vmem [shape: f32[8,1], index: 1, kind: input, shape index: {}]   ;;  %s128_s2 = inlined_call_operand.hbm [shape: f32[8,256], index: 2, kind: output, shape index: {}]  }
   0x1   :  { %8 = vsyncpa [#allocation4], 0  ;;  %s99_s9 = smov [#allocation2]  }
   0x2   :  { %s15_s10 = sshll.u32 %s99_s9, 4  ;;  %s16_s10 = int_to_ptr.vmem [resolvable:$true] %s15_s10 }
   0x3   :  { %s63_s11 = scalar_lea.vmem %s16_s10, 256  ;;  %p68_p1 = scmp.lt.s32.totalorder %s16_s10, %s16_s10 }
   0x4   :  { %p64_p0 = scmp.ne.s32.totalorder %s16_s10, %s63_s11  ;;  %p69_p2 = scmp.lt.s32.totalorder %s63_s11, %s63_s11 }
   0x6   :  { %p70_p3 = por %p69_p2, %p68_p1 }
   0x8   :  { %p71_p4 = pnand %p70_p3, %p64_p0 }
   0xa   :  { %74 = shalt.err (!%p71_p4)
}
   0xb   :  { %18 = dma.hbm_to_vmem [thread:$0]  %s126_s0, 256, %s16_s10, [#allocation3]  }
   0xc   :  { %95 = dma.done.wait [#allocation3], 256  }
   0xd   :  { %96 = vsyncadd [#allocation3], 4294967040  ;;  %v100_v0 = vmov 0   ;;  %v26_v1 = vld [vmem:[%s127_s1] sm:$0xff]  ;;  %v25_v3 = vld [vmem:[#allocation2 + $0x8] sm:$0xff]  ;;  %s101_s16 = smov [#allocation5]  }
   0xe   :  { %54 = vset.pattern.permute.xlu0 %v100_v0  ;;  %v24_v2 = vld [vmem:[#allocation2] sm:$0xff]  ;;  %s42_s17 = sshll.u32 %s101_s16, 4  ;;  %s43_s17 = int_to_ptr.vmem [resolvable:$true] %s42_s17 }
   0xf   :  { %29 = vperm.xlu0 %54, %v26_v1   ;;  %s75_s0 = scalar_lea.vmem %s43_s17, 256  ;;  %p80_p6 = scmp.lt.s32.totalorder %s43_s17, %s43_s17 }
  0x10   :  { %p76_p5 = scmp.ne.s32.totalorder %s43_s17, %s75_s0  ;;  %p81_p7 = scmp.lt.s32.totalorder %s75_s0, %s75_s0 }
  0x12   :  { %p82_p8 = por %p81_p7, %p80_p6 }
  0x14   :  { %p83_p9 = pnand %p82_p8, %p76_p5 }
  0x8a   :  { %v30_v4 = vpop.permute.xlu0 %29 }
  0x8b   :  { %v32_v5 = vmul.f32 %v30_v4, %v24_v2  ;;  %v33_v6 = vmul.f32 %v30_v4, %v25_v3 }
  0x8d   :  { %34 = vst [vmem:[#allocation5] sm:$0xff] %v32_v5  ;;  %35 = vst [vmem:[#allocation5 + $0x8] sm:$0xff] %v33_v6 }
  0x8e   :  { %86 = shalt.err (!%p83_p9)
}
  0x8f   :  { %45 = dma.vmem_to_hbm [thread:$0]  %s43_s17, 256, %s128_s2, [#allocation4]  }
  0x90   :  { %97 = dma.done.wait [#allocation4], 256  }
  0x91   :  { %98 = vsyncadd [#allocation4], 4294967040 }
  0x92   :  { %49 = vsyncpa [#allocation3], 1 }
  0x93   :  { %50 = vsyncpa [#allocation4], 1 }

</bundles_post_ra>
